<compile_context>
chip_gen: v6e
topology: v6e:2x2x1
jax: 0.10.0
libtpu: 0.0.40
codegen_flags: <defaults>
</compile_context>

<pallas_src>
import functools

import jax
import jax.numpy as jnp
from jax.experimental import pallas as pl
from jax.experimental.pallas import tpu as pltpu

NUM_CONV_CH = 4
TEMPERATURE = 1.0
LANE = 128
NEG_BIG = -1e30  # bias for padded expert columns -> ~0 softmax mass


def _round_up(x, m):
    return ((x + m - 1) // m) * m


def moe_gate_kernel(conv_w_ref, conv_b_ref,                 # SMEM (4,) scalars
                    x_ref, w1_ref, b1_ref, w2_ref, b2_ref,  # VMEM tiles
                    out_ref):
    """One batch tile: conv1d(k=1,in_ch=1)+ReLU -> fc1+ReLU -> fc2 -> softmax."""
    x = x_ref[...]                                          # (TB, D) f32

    # Fused "channel-major flatten + fc1":
    #   flat @ W1 == sum_c relu(a_c * x + b_c) @ W1[c]   with W1 as (4, D, H_pad).
    # Leading-axis indexing w1_ref[c] is a zero-cost view (no unaligned slice copy).
    acc = None
    for c in range(NUM_CONV_CH):
        ch = jnp.maximum(x * conv_w_ref[c] + conv_b_ref[c], 0.0)        # (TB, D)
        part = jnp.dot(ch, w1_ref[c], preferred_element_type=jnp.float32)
        acc = part if acc is None else acc + part                       # (TB, H_pad)

    h = jnp.maximum(acc + b1_ref[...], 0.0)                             # (TB, H_pad)

    logits = jnp.dot(h, w2_ref[...],
                     preferred_element_type=jnp.float32) + b2_ref[...]  # (TB, E_pad)
    logits = logits * (1.0 / TEMPERATURE)

    # Softmax over the (lane-dense, 128-wide) expert axis. Padded columns carry
    # a -1e30 bias so exp() underflows to 0 and they contribute no mass.
    m = jnp.max(logits, axis=-1, keepdims=True)
    e = jnp.exp(logits - m)
    out_ref[...] = e / jnp.sum(e, axis=-1, keepdims=True)


@functools.partial(jax.jit, static_argnames=("block_b",))
def moe_gate_forward(x, conv_w, conv_b, w1, b1, w2, b2, *, block_b=512):
    """x: (B, input_dim) f32.  Returns softmax gate weights (B, num_experts).

    w1: (4*input_dim, hidden_dim)  -- pre-transposed from PyTorch's (H, 4*D)
    w2: (hidden_dim, num_experts)  -- pre-transposed from PyTorch's (E, H)
    block_b must be a multiple of 8 (sublane granularity).
    """
    B, D = x.shape
    K, H = w1.shape
    E = w2.shape[1]
    assert K == NUM_CONV_CH * D
    assert block_b % 8 == 0

    h_pad = _round_up(max(H, 1), LANE)   # 128-aligned fc1 output / fc2 contraction
    e_pad = _round_up(max(E, 1), LANE)   # lane-dense output (avoids masked vst)

    # One-time (traced) weight prep: reshape to channel-major 3D + zero/neg pad.
    w1r = w1.astype(jnp.float32).reshape(NUM_CONV_CH, D, H)
    w1r = jnp.pad(w1r, ((0, 0), (0, 0), (0, h_pad - H)))
    b1p = jnp.pad(b1.astype(jnp.float32), (0, h_pad - H)).reshape(1, h_pad)
    w2p = jnp.pad(w2.astype(jnp.float32), ((0, h_pad - H), (0, e_pad - E)))
    b2p = jnp.pad(b2.astype(jnp.float32), (0, e_pad - E),
                  constant_values=NEG_BIG).reshape(1, e_pad)

    # Batch tiling: weights stay resident, x/out tiles double-buffer over HBM.
    tb = B if B <= block_b else block_b
    grid = (pl.cdiv(B, tb),)

    smem = pl.BlockSpec(memory_space=pltpu.MemorySpace.SMEM)
    in_specs = [
        smem,                                                          # conv_w
        smem,                                                          # conv_b
        pl.BlockSpec((tb, D), lambda i: (i, 0)),                       # x
        pl.BlockSpec((NUM_CONV_CH, D, h_pad), lambda i: (0, 0, 0)),    # w1 (resident)
        pl.BlockSpec((1, h_pad), lambda i: (0, 0)),                    # b1
        pl.BlockSpec((h_pad, e_pad), lambda i: (0, 0)),                # w2
        pl.BlockSpec((1, e_pad), lambda i: (0, 0)),                    # b2
    ]
    out_specs = pl.BlockSpec((tb, e_pad), lambda i: (i, 0))

    flops = 2 * B * (NUM_CONV_CH * D * h_pad + h_pad * e_pad)
    bytes_accessed = 4 * (B * D + NUM_CONV_CH * D * h_pad + h_pad
                          + h_pad * e_pad + e_pad + B * e_pad
                          + 2 * NUM_CONV_CH)
    cost = pl.CostEstimate(flops=flops,
                           transcendentals=B * e_pad,
                           bytes_accessed=bytes_accessed)

    out_padded = pl.pallas_call(
        moe_gate_kernel,
        out_shape=jax.ShapeDtypeStruct((B, e_pad), jnp.float32),
        grid=grid,
        in_specs=in_specs,
        out_specs=out_specs,
        compiler_params=pltpu.CompilerParams(
            dimension_semantics=("parallel",)),
        cost_estimate=cost,
    )(conv_w.astype(jnp.float32), conv_b.astype(jnp.float32),
      x.astype(jnp.float32), w1r, b1p, w2p, b2p)

    return out_padded[:, :E]


def moe_gate_reference(x, conv_w, conv_b, w1, b1, w2, b2):
    """Plain-JAX reference matching the PyTorch forward."""
    B, D = x.shape
    # conv1d k=1, in_ch=1: (B, 4, D), then ReLU, then channel-major flatten.
    conv = jnp.maximum(x[:, None, :] * conv_w[None, :, None]
                       + conv_b[None, :, None], 0.0)
    flat = conv.reshape(B, NUM_CONV_CH * D)
    h = jnp.maximum(flat @ w1 + b1, 0.0)
    logits = (h @ w2 + b2) / TEMPERATURE
    return jax.nn.softmax(logits, axis=1)


if __name__ == "__main__":
    # Small shapes consistent with the module.
    B, input_dim, hidden_dim, num_experts = 2, 16, 32, 2

    key = jax.random.PRNGKey(0)
    k = jax.random.split(key, 7)
    x = jax.random.normal(k[0], (B, input_dim), dtype=jnp.float32)

    # Deterministic synthetic parameter init (shapes per nn.Module __init__).
    conv_w = jax.random.normal(k[1], (NUM_CONV_CH,), dtype=jnp.float32) * 0.5
    conv_b = jax.random.normal(k[2], (NUM_CONV_CH,), dtype=jnp.float32) * 0.1
    # Stored already transposed to (in, out) for the kernel.
    w1 = jax.random.normal(k[3], (NUM_CONV_CH * input_dim, hidden_dim),
                           dtype=jnp.float32) * 0.1
    b1 = jax.random.normal(k[4], (hidden_dim,), dtype=jnp.float32) * 0.1
    w2 = jax.random.normal(k[5], (hidden_dim, num_experts),
                           dtype=jnp.float32) * 0.1
    b2 = jax.random.normal(k[6], (num_experts,), dtype=jnp.float32) * 0.1

    out = moe_gate_forward(x, conv_w, conv_b, w1, b1, w2, b2)
    out = jax.block_until_ready(out)

    ref = moe_gate_reference(x, conv_w, conv_b, w1, b1, w2, b2)
    assert out.shape == (B, num_experts), out.shape
    assert jnp.allclose(out, ref, atol=1e-5, rtol=1e-5), (out, ref)
    assert jnp.allclose(jnp.sum(out, axis=1), 1.0, atol=1e-5)

    print("KERNEL_OK")
</pallas_src>

<mosaic_0001>
module attributes {stable_mosaic.version = 11 : i64} {
  func.func @moe_gate_kernel(%arg0: i32, %arg1: memref<4xf32, #tpu.memory_space<smem>>, %arg2: memref<4xf32, #tpu.memory_space<smem>>, %arg3: memref<2x16xf32, #tpu.memory_space<vmem>>, %arg4: memref<4x16x128xf32, #tpu.memory_space<vmem>>, %arg5: memref<1x128xf32, #tpu.memory_space<vmem>>, %arg6: memref<128x128xf32, #tpu.memory_space<vmem>>, %arg7: memref<1x128xf32, #tpu.memory_space<vmem>>, %arg8: memref<2x128xf32, #tpu.memory_space<vmem>>) attributes {dimension_semantics = [#tpu.dimension_semantics<parallel>], iteration_bounds = array<i64: 1>, scalar_prefetch = 0 : i64, scratch_operands = 0 : i64, tpu.core_type = #tpu.core_type<tc>, window_params = [{transform_indices = @transform_0, window_bounds = array<i64: 4>}, {transform_indices = @transform_1, window_bounds = array<i64: 4>}, {transform_indices = @transform_2, window_bounds = array<i64: 2, 16>}, {pipeline_mode = #tpu.pipeline_mode<synchronous>, transform_indices = @transform_3, window_bounds = array<i64: 4, 16, 128>}, {pipeline_mode = #tpu.pipeline_mode<synchronous>, transform_indices = @transform_4, window_bounds = array<i64: 1, 128>}, {pipeline_mode = #tpu.pipeline_mode<synchronous>, transform_indices = @transform_5, window_bounds = array<i64: 128, 128>}, {pipeline_mode = #tpu.pipeline_mode<synchronous>, transform_indices = @transform_6, window_bounds = array<i64: 1, 128>}, {transform_indices = @transform_7, window_bounds = array<i64: 2, 128>}]} {
    %c0 = arith.constant 0 : index
    %c0_0 = arith.constant 0 : index
    %0 = vector.load %arg3[%c0, %c0_0] : memref<2x16xf32, #tpu.memory_space<vmem>>, vector<2x16xf32>
    %c0_1 = arith.constant 0 : index
    %1 = memref.load %arg1[%c0_1] : memref<4xf32, #tpu.memory_space<smem>>
    %2 = vector.broadcast %1 : f32 to vector<2x16xf32>
    %3 = arith.mulf %0, %2 : vector<2x16xf32>
    %c0_2 = arith.constant 0 : index
    %4 = memref.load %arg2[%c0_2] : memref<4xf32, #tpu.memory_space<smem>>
    %5 = vector.broadcast %4 : f32 to vector<2x16xf32>
    %6 = arith.addf %3, %5 : vector<2x16xf32>
    %cst = arith.constant 0.000000e+00 : f32
    %7 = vector.broadcast %cst : f32 to vector<2x16xf32>
    %8 = arith.maximumf %6, %7 : vector<2x16xf32>
    %c0_3 = arith.constant 0 : index
    %c0_4 = arith.constant 0 : index
    %c0_5 = arith.constant 0 : index
    %9 = vector.load %arg4[%c0_3, %c0_4, %c0_5] : memref<4x16x128xf32, #tpu.memory_space<vmem>>, vector<1x16x128xf32>
    %10 = vector.shape_cast %9 : vector<1x16x128xf32> to vector<16x128xf32>
    %cst_6 = arith.constant dense<0.000000e+00> : vector<2x128xf32>
    %11 = tpu.matmul %8, %10, %cst_6 {dimension_numbers = #tpu.dot_dimension_numbers<[1], [0], [0], [1], [0, 0, 1, 1], [], []>} : vector<2x16xf32>, vector<16x128xf32>, vector<2x128xf32> -> vector<2x128xf32>
    %c1 = arith.constant 1 : index
    %12 = memref.load %arg1[%c1] : memref<4xf32, #tpu.memory_space<smem>>
    %13 = vector.broadcast %12 : f32 to vector<2x16xf32>
    %14 = arith.mulf %0, %13 : vector<2x16xf32>
    %c1_7 = arith.constant 1 : index
    %15 = memref.load %arg2[%c1_7] : memref<4xf32, #tpu.memory_space<smem>>
    %16 = vector.broadcast %15 : f32 to vector<2x16xf32>
    %17 = arith.addf %14, %16 : vector<2x16xf32>
    %cst_8 = arith.constant 0.000000e+00 : f32
    %18 = vector.broadcast %cst_8 : f32 to vector<2x16xf32>
    %19 = arith.maximumf %17, %18 : vector<2x16xf32>
    %c1_9 = arith.constant 1 : index
    %c0_10 = arith.constant 0 : index
    %c0_11 = arith.constant 0 : index
    %20 = vector.load %arg4[%c1_9, %c0_10, %c0_11] : memref<4x16x128xf32, #tpu.memory_space<vmem>>, vector<1x16x128xf32>
    %21 = vector.shape_cast %20 : vector<1x16x128xf32> to vector<16x128xf32>
    %cst_12 = arith.constant dense<0.000000e+00> : vector<2x128xf32>
    %22 = tpu.matmul %19, %21, %cst_12 {dimension_numbers = #tpu.dot_dimension_numbers<[1], [0], [0], [1], [0, 0, 1, 1], [], []>} : vector<2x16xf32>, vector<16x128xf32>, vector<2x128xf32> -> vector<2x128xf32>
    %23 = arith.addf %11, %22 : vector<2x128xf32>
    %c2 = arith.constant 2 : index
    %24 = memref.load %arg1[%c2] : memref<4xf32, #tpu.memory_space<smem>>
    %25 = vector.broadcast %24 : f32 to vector<2x16xf32>
    %26 = arith.mulf %0, %25 : vector<2x16xf32>
    %c2_13 = arith.constant 2 : index
    %27 = memref.load %arg2[%c2_13] : memref<4xf32, #tpu.memory_space<smem>>
    %28 = vector.broadcast %27 : f32 to vector<2x16xf32>
    %29 = arith.addf %26, %28 : vector<2x16xf32>
    %cst_14 = arith.constant 0.000000e+00 : f32
    %30 = vector.broadcast %cst_14 : f32 to vector<2x16xf32>
    %31 = arith.maximumf %29, %30 : vector<2x16xf32>
    %c2_15 = arith.constant 2 : index
    %c0_16 = arith.constant 0 : index
    %c0_17 = arith.constant 0 : index
    %32 = vector.load %arg4[%c2_15, %c0_16, %c0_17] : memref<4x16x128xf32, #tpu.memory_space<vmem>>, vector<1x16x128xf32>
    %33 = vector.shape_cast %32 : vector<1x16x128xf32> to vector<16x128xf32>
    %cst_18 = arith.constant dense<0.000000e+00> : vector<2x128xf32>
    %34 = tpu.matmul %31, %33, %cst_18 {dimension_numbers = #tpu.dot_dimension_numbers<[1], [0], [0], [1], [0, 0, 1, 1], [], []>} : vector<2x16xf32>, vector<16x128xf32>, vector<2x128xf32> -> vector<2x128xf32>
    %35 = arith.addf %23, %34 : vector<2x128xf32>
    %c3 = arith.constant 3 : index
    %36 = memref.load %arg1[%c3] : memref<4xf32, #tpu.memory_space<smem>>
    %37 = vector.broadcast %36 : f32 to vector<2x16xf32>
    %38 = arith.mulf %0, %37 : vector<2x16xf32>
    %c3_19 = arith.constant 3 : index
    %39 = memref.load %arg2[%c3_19] : memref<4xf32, #tpu.memory_space<smem>>
    %40 = vector.broadcast %39 : f32 to vector<2x16xf32>
    %41 = arith.addf %38, %40 : vector<2x16xf32>
    %cst_20 = arith.constant 0.000000e+00 : f32
    %42 = vector.broadcast %cst_20 : f32 to vector<2x16xf32>
    %43 = arith.maximumf %41, %42 : vector<2x16xf32>
    %c3_21 = arith.constant 3 : index
    %c0_22 = arith.constant 0 : index
    %c0_23 = arith.constant 0 : index
    %44 = vector.load %arg4[%c3_21, %c0_22, %c0_23] : memref<4x16x128xf32, #tpu.memory_space<vmem>>, vector<1x16x128xf32>
    %45 = vector.shape_cast %44 : vector<1x16x128xf32> to vector<16x128xf32>
    %cst_24 = arith.constant dense<0.000000e+00> : vector<2x128xf32>
    %46 = tpu.matmul %43, %45, %cst_24 {dimension_numbers = #tpu.dot_dimension_numbers<[1], [0], [0], [1], [0, 0, 1, 1], [], []>} : vector<2x16xf32>, vector<16x128xf32>, vector<2x128xf32> -> vector<2x128xf32>
    %47 = arith.addf %35, %46 : vector<2x128xf32>
    %c0_25 = arith.constant 0 : index
    %c0_26 = arith.constant 0 : index
    %48 = vector.load %arg5[%c0_25, %c0_26] : memref<1x128xf32, #tpu.memory_space<vmem>>, vector<1x128xf32>
    %49 = vector.broadcast %48 : vector<1x128xf32> to vector<2x128xf32>
    %50 = arith.addf %47, %49 : vector<2x128xf32>
    %cst_27 = arith.constant 0.000000e+00 : f32
    %51 = vector.broadcast %cst_27 : f32 to vector<2x128xf32>
    %52 = arith.maximumf %50, %51 : vector<2x128xf32>
    %c0_28 = arith.constant 0 : index
    %c0_29 = arith.constant 0 : index
    %53 = vector.load %arg6[%c0_28, %c0_29] : memref<128x128xf32, #tpu.memory_space<vmem>>, vector<128x128xf32>
    %cst_30 = arith.constant dense<0.000000e+00> : vector<2x128xf32>
    %54 = tpu.matmul %52, %53, %cst_30 {dimension_numbers = #tpu.dot_dimension_numbers<[1], [0], [0], [1], [0, 0, 1, 1], [], []>} : vector<2x128xf32>, vector<128x128xf32>, vector<2x128xf32> -> vector<2x128xf32>
    %c0_31 = arith.constant 0 : index
    %c0_32 = arith.constant 0 : index
    %55 = vector.load %arg7[%c0_31, %c0_32] : memref<1x128xf32, #tpu.memory_space<vmem>>, vector<1x128xf32>
    %56 = vector.broadcast %55 : vector<1x128xf32> to vector<2x128xf32>
    %57 = arith.addf %54, %56 : vector<2x128xf32>
    %cst_33 = arith.constant 1.000000e+00 : f32
    %58 = vector.broadcast %cst_33 : f32 to vector<2x128xf32>
    %59 = arith.mulf %57, %58 : vector<2x128xf32>
    %cst_34 = arith.constant dense<0xFF800000> : vector<2xf32>
    %60 = vector.multi_reduction <maximumf>, %59, %cst_34 [1] : vector<2x128xf32> to vector<2xf32>
    %61 = vector.shape_cast %60 : vector<2xf32> to vector<2x1xf32>
    %62 = vector.broadcast %61 : vector<2x1xf32> to vector<2x128xf32>
    %63 = arith.subf %59, %62 : vector<2x128xf32>
    %64 = math.exp %63 : vector<2x128xf32>
    %cst_35 = arith.constant dense<0.000000e+00> : vector<2xf32>
    %65 = vector.multi_reduction <add>, %64, %cst_35 [1] : vector<2x128xf32> to vector<2xf32>
    %66 = vector.shape_cast %65 : vector<2xf32> to vector<2x1xf32>
    %67 = vector.broadcast %66 : vector<2x1xf32> to vector<2x128xf32>
    %68 = arith.divf %64, %67 : vector<2x128xf32>
    %c0_36 = arith.constant 0 : index
    %c0_37 = arith.constant 0 : index
    %69 = vector.load %arg8[%c0_36, %c0_37] : memref<2x128xf32, #tpu.memory_space<vmem>>, vector<2x128xf32>
    tpu.vector_store %arg8[%c0_36, %c0_37], %68 {strides = array<i32>} : memref<2x128xf32, #tpu.memory_space<vmem>>, vector<2x128xf32>,
    return
  }
  func.func @transform_0(%arg0: i32) -> i32 {
    %c0_i32 = arith.constant 0 : i32
    %c0_i32_0 = arith.constant 0 : i32
    return %c0_i32 : i32
  }
  func.func @transform_1(%arg0: i32) -> i32 {
    %c0_i32 = arith.constant 0 : i32
    %c0_i32_0 = arith.constant 0 : i32
    return %c0_i32 : i32
  }
  func.func @transform_2(%arg0: i32) -> (i32, i32) {
    %c0_i32 = arith.constant 0 : i32
    %c0_i32_0 = arith.constant 0 : i32
    return %arg0, %c0_i32 : i32, i32
  }
  func.func @transform_3(%arg0: i32) -> (i32, i32, i32) {
    %c0_i32 = arith.constant 0 : i32
    %c0_i32_0 = arith.constant 0 : i32
    %c0_i32_1 = arith.constant 0 : i32
    %c0_i32_2 = arith.constant 0 : i32
    return %c0_i32, %c0_i32_0, %c0_i32_1 : i32, i32, i32
  }
  func.func @transform_4(%arg0: i32) -> (i32, i32) {
    %c0_i32 = arith.constant 0 : i32
    %c0_i32_0 = arith.constant 0 : i32
    %c0_i32_1 = arith.constant 0 : i32
    return %c0_i32, %c0_i32_0 : i32, i32
  }
  func.func @transform_5(%arg0: i32) -> (i32, i32) {
    %c0_i32 = arith.constant 0 : i32
    %c0_i32_0 = arith.constant 0 : i32
    %c0_i32_1 = arith.constant 0 : i32
    return %c0_i32, %c0_i32_0 : i32, i32
  }
  func.func @transform_6(%arg0: i32) -> (i32, i32) {
    %c0_i32 = arith.constant 0 : i32
    %c0_i32_0 = arith.constant 0 : i32
    %c0_i32_1 = arith.constant 0 : i32
    return %c0_i32, %c0_i32_0 : i32, i32
  }
  func.func @transform_7(%arg0: i32) -> (i32, i32) {
    %c0_i32 = arith.constant 0 : i32
    %c0_i32_0 = arith.constant 0 : i32
    return %arg0, %c0_i32 : i32, i32
  }
}

</mosaic_0001>

<bundles_post_ra>
// kernel: moe_gate_forward.1
= control target key start
LH: loop header
LB: loop body
LE: loop exit
PB: predicated region body
PF: predicated region fallthrough
CT: control target
= control target key end

     0   :  { %12 = vsyncpa [#allocation4], 0  ;;  %s869_s0 = inlined_call_operand.vmem [shape: f32[4], index: 0, kind: input, shape index: {}]   ;;  %s870_s1 = inlined_call_operand.vmem [shape: f32[4], index: 1, kind: input, shape index: {}]   ;;  %s871_s2 = inlined_call_operand.vmem [shape: f32[2,16], index: 2, kind: input, shape index: {}]   ;;  %s872_s3 = inlined_call_operand.vmem [shape: f32[4,16,128], index: 3, kind: input, shape index: {}]   ;;  %s873_s4 = inlined_call_operand.vmem [shape: f32[1,128], index: 4, kind: input, shape index: {}]   ;;  %s874_s5 = inlined_call_operand.vmem [shape: f32[128,128], index: 5, kind: input, shape index: {}]   ;;  %s875_s6 = inlined_call_operand.vmem [shape: f32[1,128], index: 6, kind: input, shape index: {}]   ;;  %s876_s7 = inlined_call_operand.hbm [shape: f32[2,128], index: 7, kind: output, shape index: {}]  }
   0x1   :  { %13 = vsyncpa [#allocation6], 0 }
   0x2   :  { %14 = vsyncpa [#allocation3], 0  ;;  %s21_s26 = sshll.u32 %s869_s0, 4  ;;  %s31_s29 = sshll.u32 %s870_s1, 4  ;;  %s22_s26 = int_to_ptr.vmem [resolvable:$true] %s21_s26  ;;  %s32_s29 = int_to_ptr.vmem [resolvable:$true] %s31_s29 }
   0x3   :  { %s637_s30 = scalar_lea.vmem %s22_s26, 16  ;;  %p642_p1 = scmp.lt.s32.totalorder %s22_s26, %s22_s26 }
   0x4   :  { %p638_p0 = scmp.ne.s32.totalorder %s22_s26, %s637_s30  ;;  %p643_p2 = scmp.lt.s32.totalorder %s637_s30, %s637_s30 }
   0x6   :  { %p644_p3 = por %p643_p2, %p642_p1 }
   0x8   :  { %p645_p4 = pnand %p644_p3, %p638_p0 }
   0xa   :  { %648 = shalt.err (!%p645_p4)
}
   0xb   :  { %s687_s8 = smov [#allocation2]   ;;  %s649_s9 = scalar_lea.vmem %s32_s29, 16 }
   0xc   :  { %24 = dma.vmem_to_smem %s22_s26, 16, %s687_s8, [#allocation4]  }
   0xd   :  { %p650_p5 = scmp.ne.s32.totalorder %s32_s29, %s649_s9  ;;  %p654_p6 = scmp.lt.s32.totalorder %s32_s29, %s32_s29 }
   0xe   :  { %p655_p7 = scmp.lt.s32.totalorder %s649_s9, %s649_s9 }
  0x10   :  { %p656_p8 = por %p655_p7, %p654_p6 }
  0x12   :  { %p657_p9 = pnand %p656_p8, %p650_p5 }
  0x14   :  { %660 = shalt.err (!%p657_p9)
}
  0x15   :  { %s688_s0 = smov [#allocation5]  }
  0x16   :  { %34 = dma.vmem_to_smem %s32_s29, 16, %s688_s0, [#allocation6]  }
  0x17   :  { %681 = dma.done.wait [#allocation4], 16  }
  0x18   :  { %682 = vsyncadd [#allocation4], 4294967280 }
  0x19   :  { %683 = dma.done.wait [#allocation6], 16  }
  0x1a   :  { %684 = vsyncadd [#allocation6], 4294967280 }
  0x1b   :  { %51 = sfence }
  0x1c   :  { %v521_v0 = vld [vmem:[%s872_s3 + $0x18] sm:$0xff]  ;;  %v689_v1 = vmov 0.0   ;;  %v520_v2 = vld [vmem:[%s872_s3 + $0x10] sm:$0xff]  ;;  %vm690_vm0 = vmmov 0   ;;  %s518_s13 = sld [smem:[#allocation2 + $0x1]]  ;;  %v409_v6 = vld [vmem:[%s874_s5 + $0x68] sm:$0xff] }
  0x1d   :  { %565 = vmatprep.subr.mxu1 %v689_v1  ;;  %569 = vmatprep.mubr.msk.f32.mxu1 %vm690_vm0, %v689_v1  ;;  %s519_s14 = sld [smem:[#allocation5 + $0x1]]  ;;  %v411_v3 = vld [vmem:[%s874_s5 + $0x78] sm:$0xff]  ;;  %v410_v4 = vld [vmem:[%s874_s5 + $0x70] sm:$0xff]  ;;  %v52_v5 = vld [vmem:[%s871_s2] sm:$0x3]  ;;  %vm72_vm1 = vcmask 130048  }
  0x1e   :  { %566 = vmatpush3.msra.mxu1 %v521_v0  ;;  %593 = vmatprep.subr.mxu0 %v689_v1  ;;  %s53_s15 = sld [smem:[#allocation2]]  ;;  %v408_v8 = vld [vmem:[%s874_s5 + $0x60] sm:$0xff]  ;;  %v407_v12 = vld [vmem:[%s874_s5 + $0x58] sm:$0xff]  ;;  %v406_v17 = vld [vmem:[%s874_s5 + $0x50] sm:$0xff]  ;;  %vm489_vm2 = vcmask 1041408  }
  0x1f   :  { %567 = vmatprep.subr.mxu1 %v689_v1  ;;  %625 = vmatprep.mubr.msk.f32.mxu0 %vm690_vm0, %v689_v1  ;;  %s757_s20 = sld [smem:[#allocation5]]  ;;  %v61_v19 = vld [vmem:[%s872_s3 + $0x8] sm:$0xff]  ;;  %v60_v24 = vld [vmem:[%s872_s3] sm:$0xff]  ;;  %v532_v33 = vld [vmem:[%s872_s3 + $0x38] sm:$0xff] }
  0x20   :  { %568 = vmatpush3.msra.mxu1 %v520_v2  ;;  %594 = vmatpush3.msra.mxu0 %v411_v3  ;;  %s524_s23 = sld [smem:[#allocation2 + $0x2]]  ;;  %v527_v29 = vld [vmem:[%s872_s3 + $0x28] sm:$0xff]  ;;  %v526_v30 = vld [vmem:[%s872_s3 + $0x20] sm:$0xff]  ;;  %v531_v34 = vld [vmem:[%s872_s3 + $0x30] sm:$0xff] }
  0x21   :  { %572 = vmatprep.subr.mxu1 %v689_v1  ;;  %595 = vmatprep.subr.mxu0 %v689_v1  ;;  %s767_s26 = sld [smem:[#allocation5 + $0x2]]  ;;  %v405_v36 = vld [vmem:[%s874_s5 + $0x48] sm:$0xff]  ;;  %v404_v37 = vld [vmem:[%s874_s5 + $0x40] sm:$0xff]  ;;  %v403_v38 = vld [vmem:[%s874_s5 + $0x38] sm:$0xff] }
  0x22   :  { %596 = vmatpush3.msra.mxu0 %v410_v4  ;;  %v63_v7 = vstv %s518_s13  ;;  %s529_s27 = sld [smem:[#allocation2 + $0x3]]  ;;  %v402_v39 = vld [vmem:[%s874_s5 + $0x30] sm:$0xff]  ;;  %v401_v40 = vld [vmem:[%s874_s5 + $0x28] sm:$0xff]  ;;  %v400_v41 = vld [vmem:[%s874_s5 + $0x20] sm:$0xff] }
  0x23   :  { %597 = vmatprep.subr.mxu0 %v689_v1  ;;  %v64_v9 = vmul.f32 %v63_v7, %v52_v5  ;;  %v66_v10 = vstv %s519_s14  ;;  %s773_s2 = sld [smem:[#allocation5 + $0x3]]  ;;  %v399_v42 = vld [vmem:[%s874_s5 + $0x18] sm:$0xff]  ;;  %v398_v43 = vld [vmem:[%s874_s5 + $0x10] sm:$0xff]  ;;  %v397_v44 = vld [vmem:[%s874_s5 + $0x8] sm:$0xff] }
  0x24   :  { %598 = vmatpush3.msra.mxu0 %v409_v6  ;;  %v54_v11 = vstv %s53_s15  ;;  %v396_v45 = vld [vmem:[%s874_s5] sm:$0xff] }
  0x25   :  { %599 = vmatprep.subr.mxu0 %v689_v1  ;;  %v67_v13 = vadd.f32 %v66_v10, %v64_v9  ;;  %v55_v14 = vmul.f32 %v54_v11, %v52_v5  ;;  %v57_v15 = vstv %s757_s20  ;;  %v534_v55 = vld [vmem:[%s873_s4] ss:$0 sm:$0xff]  ;;  %s691_s4 = smov [#allocation7]  }
  0x26   :  { %600 = vmatpush3.msra.mxu0 %v408_v8  ;;  %v220_v16 = vstv %s524_s23  ;;  %v535_v60 = vld [vmem:[%s875_s6] ss:$0 sm:$0xff]  ;;  %s508_s17 = sshll.u32 %s691_s4, 4  ;;  %s509_s17 = int_to_ptr.vmem [resolvable:$true] %s508_s17 }
  0x27   :  { %601 = vmatprep.subr.mxu0 %v689_v1  ;;  %v68_v18 = vmax.f32 %v67_v13, 0.0  ;;  %v58_v20 = vadd.f32 %v57_v15, %v55_v14  ;;  %v221_v21 = vmul.f32 %v220_v16, %v52_v5  ;;  %v223_v22 = vstv %s767_s26  ;;  %s661_s6 = scalar_lea.vmem %s509_s17, 32  ;;  %p666_p11 = scmp.lt.s32.totalorder %s509_s17, %s509_s17 }
  0x28   :  { %602 = vmatpush3.msra.mxu0 %v407_v12  ;;  %v304_v23 = vstv %s529_s27  ;;  %p662_p10 = scmp.ne.s32.totalorder %s509_s17, %s661_s6  ;;  %p667_p12 = scmp.lt.s32.totalorder %s661_s6, %s661_s6 }
  0x29   :  { %603 = vmatprep.subr.mxu0 %v689_v1  ;;  %570 = vmatmul.mubr.msk.f32.vlgmr.msra.gmra.mxu1 %vm72_vm1, %v68_v18  ;;  %v59_v25 = vmax.f32 %v58_v20, 0.0  ;;  %v224_v26 = vadd.f32 %v223_v22, %v221_v21  ;;  %v305_v27 = vmul.f32 %v304_v23, %v52_v5  ;;  %v307_v28 = vstv %s773_s2 }
  0x2a   :  { %604 = vmatpush3.msra.mxu0 %v406_v17  ;;  %573 = vmatpush3.msra.mxu1 %v61_v19  ;;  %p668_p13 = por %p667_p12, %p666_p11 }
  0x2b   :  { %576 = vmatprep.mubr.msk.f32.mxu1 %vm690_vm0, %v689_v1  ;;  %574 = vmatprep.subr.mxu1 %v689_v1  ;;  %v225_v31 = vmax.f32 %v224_v26, 0.0  ;;  %v308_v32 = vadd.f32 %v307_v28, %v305_v27 }
  0x2c   :  { %605 = vmatprep.subr.mxu0 %v689_v1  ;;  %575 = vmatpush3.msra.mxu1 %v60_v24  ;;  %p669_p0 = pnand %p668_p13, %p662_p10 }
  0x2d   :  { %579 = vmatprep.subr.mxu1 %v689_v1  ;;  %577 = vmatmul.mubr.msk.f32.vlgmr.msra.gmra.mxu1 %vm72_vm1, %v59_v25  ;;  %v309_v35 = vmax.f32 %v308_v32, 0.0 }
  0x2e   :  { %580 = vmatpush3.msra.mxu1 %v527_v29  ;;  %583 = vmatprep.mubr.msk.f32.mxu1 %vm690_vm0, %v689_v1 }
  0x2f   :  { %581 = vmatprep.subr.mxu1 %v689_v1  ;;  %606 = vmatpush3.msra.mxu0 %v405_v36 }
  0x30   :  { %582 = vmatpush3.msra.mxu1 %v526_v30  ;;  %607 = vmatprep.subr.mxu0 %v689_v1 }
  0x31   :  { %586 = vmatprep.subr.mxu1 %v689_v1  ;;  %584 = vmatmul.mubr.msk.f32.vlgmr.msra.gmra.mxu1 %vm72_vm1, %v225_v31 }
  0x32   :  { %587 = vmatpush3.msra.mxu1 %v532_v33  ;;  %590 = vmatprep.mubr.msk.f32.mxu1 %vm690_vm0, %v689_v1 }
  0x33   :  { %588 = vmatprep.subr.mxu1 %v689_v1  ;;  %608 = vmatpush3.msra.mxu0 %v404_v37 }
  0x34   :  { %589 = vmatpush3.msra.mxu1 %v531_v34  ;;  %609 = vmatprep.subr.mxu0 %v689_v1 }
  0x35   :  { %591 = vmatmul.mubr.msk.f32.vlgmr.msra.gmra.mxu1 %vm72_vm1, %v309_v35  ;;  %610 = vmatpush3.msra.mxu0 %v403_v38 }
  0x36   :  { %611 = vmatprep.subr.mxu0 %v689_v1 }
  0x37   :  { %612 = vmatpush3.msra.mxu0 %v402_v39 }
  0x38   :  { %613 = vmatprep.subr.mxu0 %v689_v1 }
  0x39   :  { %614 = vmatpush3.msra.mxu0 %v401_v40 }
  0x3a   :  { %615 = vmatprep.subr.mxu0 %v689_v1 }
  0x3b   :  { %616 = vmatpush3.msra.mxu0 %v400_v41 }
  0x3c   :  { %617 = vmatprep.subr.mxu0 %v689_v1 }
  0x3d   :  { %618 = vmatpush3.msra.mxu0 %v399_v42 }
  0x3e   :  { %619 = vmatprep.subr.mxu0 %v689_v1 }
  0x3f   :  { %620 = vmatpush3.msra.mxu0 %v398_v43 }
  0x40   :  { %621 = vmatprep.subr.mxu0 %v689_v1 }
  0x41   :  { %622 = vmatpush3.msra.mxu0 %v397_v44 }
  0x42   :  { %623 = vmatprep.subr.mxu0 %v689_v1 }
  0x43   :  { %624 = vmatpush3.msra.mxu0 %v396_v45 }
  0xe9   :  { %v142_v46 = vpop.f32.mrf.mxu1 }
  0xeb   :  { %v571_v47 = vpop.f32.mrf.mxu1 }
  0xed   :  { %v215_v48 = vpop.f32.mrf.mxu1 }
  0xee   :  { %v216_v51 = vadd.f32 %v215_v48, %v142_v46 }
  0xef   :  { %v578_v49 = vpop.f32.mrf.mxu1 }
  0xf1   :  { %v298_v50 = vpop.f32.mrf.mxu1 }
  0xf2   :  { %v302_v53 = vadd.f32 %v298_v50, %v216_v51 }
  0xf3   :  { %v585_v52 = vpop.f32.mrf.mxu1 }
  0xf5   :  { %v382_v54 = vpop.f32.mrf.mxu1 }
  0xf6   :  { %v386_v56 = vadd.f32 %v382_v54, %v302_v53 }
  0xf7   :  { %v592_v57 = vpop.f32.mrf.mxu1 }
  0xf8   :  { %v394_v58 = vadd.f32 %v534_v55, %v386_v56 }
  0xfa   :  { %v395_v59 = vmax.f32 %v394_v58, 0.0 }
  0xfc   :  { %626 = vmatmul.mubr.f32.vlgmr.msra.gmra.mxu0 %v395_v59 }
 0x1bc   :  { %v485_v61 = vpop.f32.mrf.mxu0 }
 0x1bd   :  { %v486_v62 = vadd.f32 %v535_v60, %v485_v61 }
 0x1be   :  { %v627_v63 = vpop.f32.mrf.mxu0 }
 0x1bf   :  { %v490_v0 = vsel %vm489_vm2, %v486_v62, -inf }
 0x1c0   :  { %491 = vmax.xlane.f32.xlu0 %v490_v0 }
 0x249   :  { %v492_v1 = vpop.xlane.xlu0 %491 }
 0x24a   :  { %v493_v2 = vsub.f32 %v486_v62, %v492_v1 }
 0x24c   :  { %v494_v3 = vmul.f32 1.442695, %v493_v2 }
 0x24e   :  { %633 = vpow2.f32 %v494_v3 }
 0x25b   :  { %v634_v4 = vpop.eup %633 }
 0x25c   :  { %v496_v5 = vsel %vm489_vm2, %v634_v4, 0.0 }
 0x25d   :  { %497 = vadd.xlane.f32.xlu0 %v496_v5 }
 0x2e6   :  { %v498_v6 = vpop.xlane.xlu0 %497 }
 0x2e7   :  { %635 = vrcp.f32 %v498_v6 }
 0x2f4   :  { %v636_v7 = vpop.eup %635 }
 0x2f5   :  { %v500_v8 = vmul.f32 %v636_v7, %v634_v4 }
 0x2f7   :  { %501 = vst [vmem:[#allocation7] sm:$0x3] %v500_v8 }
 0x2f8   :  { %672 = shalt.err (!%p669_p0)
}
 0x2f9   :  { %511 = dma.vmem_to_hbm [thread:$0]  %s509_s17, 32, %s876_s7, [#allocation3]  }
 0x2fa   :  { %685 = dma.done.wait [#allocation3], 32  }
 0x2fb   :  { %686 = vsyncadd [#allocation3], 4294967264 }
 0x2fc   :  { %515 = vsyncpa [#allocation3], 1 }
 0x2fd   :  { %516 = vsyncpa [#allocation4], 1 }
 0x2fe   :  { %517 = vsyncpa [#allocation6], 1 }

</bundles_post_ra>
